<compile_context>
chip_gen: v6e
topology: v6e:2x2x1
jax: 0.10.0
libtpu: 0.0.40
codegen_flags: <defaults>
</compile_context>

<pallas_src>
import jax
import jax.numpy as jnp
from jax.experimental import pallas as pl
from jax.experimental.pallas import tpu as pltpu

INPUT_SIZE = 24
HIDDEN_SIZE = 32
OUTPUT_SIZE = 3
LEAKY_SLOPE = 0.01        # torch.nn.LeakyReLU default negative_slope
MAX_TB = 2048             # max batch tile (rows per grid step), multiple of 8


def _round_up(n, m):
    return ((n + m - 1) // m) * m


def _mlp_kernel(x_ref, w1_ref, b1_ref, w2_ref, b2_ref, o_ref):
    # layer1: x @ w1 + b1  (f32 accumulation on the MXU)
    x = x_ref[...]
    h = jnp.dot(x, w1_ref[...], preferred_element_type=jnp.float32) + b1_ref[...]
    # LeakyReLU (negative_slope = 0.01)
    h = jnp.where(h >= 0, h, LEAKY_SLOPE * h)
    # layer2: h @ w2 + b2, narrow (tb, 3) result -> masked vst, negligible cost
    o = jnp.dot(h, w2_ref[...], preferred_element_type=jnp.float32) + b2_ref[...]
    o_ref[...] = o.astype(o_ref.dtype)


def mlp_forward(x, w1, b1, w2, b2, *, max_tb=MAX_TB):
    B = x.shape[0]

    # Batch tile: multiple of 8 (sublane); aim for >= 2 grid steps so the
    # "parallel" batch axis can be split across v7x's two TensorCores, but
    # never exceed max_tb (amortizes the ~0.35 us per-step overhead).
    tb = min(max_tb, max(8, _round_up(pl.cdiv(B, 2), 8)))
    grid = (pl.cdiv(B, tb),)   # ragged tail handled by Pallas (no jnp.pad copy)

    # Advisory cost: tiny FLOPs, HBM-bound on B*(96 + 12) bytes of activations.
    flops = 2 * B * (INPUT_SIZE * HIDDEN_SIZE + HIDDEN_SIZE * OUTPUT_SIZE)
    bytes_accessed = 4 * (
        B * (INPUT_SIZE + OUTPUT_SIZE)
        + INPUT_SIZE * HIDDEN_SIZE + HIDDEN_SIZE
        + HIDDEN_SIZE * OUTPUT_SIZE + OUTPUT_SIZE
    )
    cost = pl.CostEstimate(flops=flops, transcendentals=0,
                           bytes_accessed=bytes_accessed)

    out = pl.pallas_call(
        _mlp_kernel,
        out_shape=jax.ShapeDtypeStruct((B, OUTPUT_SIZE), x.dtype),
        grid=grid,
        in_specs=[
            # Streamed batch tiles of x.
            pl.BlockSpec((tb, INPUT_SIZE), lambda i: (i, 0)),
            # Weights / biases: same block every grid step -> one DMA, resident.
            pl.BlockSpec((INPUT_SIZE, HIDDEN_SIZE), lambda i: (0, 0)),
            pl.BlockSpec((1, HIDDEN_SIZE), lambda i: (0, 0)),
            pl.BlockSpec((HIDDEN_SIZE, OUTPUT_SIZE), lambda i: (0, 0)),
            pl.BlockSpec((1, OUTPUT_SIZE), lambda i: (0, 0)),
        ],
        out_specs=pl.BlockSpec((tb, OUTPUT_SIZE), lambda i: (i, 0)),
        compiler_params=pltpu.CompilerParams(
            dimension_semantics=("parallel",),      # megacore split on v7x
            vmem_limit_bytes=16 * 1024 * 1024,      # ~6 MiB actually used at tb=2048
        ),
        cost_estimate=cost,
    )(x, w1, b1, w2, b2)

    return out


def _reference(x, w1, b1, w2, b2):
    h = x @ w1 + b1
    h = jnp.where(h >= 0, h, LEAKY_SLOPE * h)
    return h @ w2 + b2


def init_params(key):
    # Deterministic synthetic init (matches PyTorch nn.Linear's uniform range
    # +-1/sqrt(fan_in), but this is not a checkpoint load).
    k1, k2, k3, k4 = jax.random.split(key, 4)
    bound1 = 1.0 / jnp.sqrt(INPUT_SIZE)
    bound2 = 1.0 / jnp.sqrt(HIDDEN_SIZE)
    # Stored transposed relative to PyTorch: (in, out) instead of (out, in).
    w1 = jax.random.uniform(k1, (INPUT_SIZE, HIDDEN_SIZE), jnp.float32,
                            -bound1, bound1)
    b1 = jax.random.uniform(k2, (1, HIDDEN_SIZE), jnp.float32, -bound1, bound1)
    w2 = jax.random.uniform(k3, (HIDDEN_SIZE, OUTPUT_SIZE), jnp.float32,
                            -bound2, bound2)
    b2 = jax.random.uniform(k4, (1, OUTPUT_SIZE), jnp.float32, -bound2, bound2)
    return w1, b1, w2, b2


if __name__ == "__main__":
    key = jax.random.PRNGKey(0)
    kx, kp = jax.random.split(key)
    w1, b1, w2, b2 = init_params(kp)

    # Small demo-scale batch (at B=8 dispatch dominates; the kernel is meant to
    # be amortized over large batches with tb up to 2048).
    batch = 8
    x = jax.random.normal(kx, (batch, INPUT_SIZE), jnp.float32)

    out = mlp_forward(x, w1, b1, w2, b2)
    jax.block_until_ready(out)
    ref = _reference(x, w1, b1, w2, b2)
    assert out.shape == (batch, OUTPUT_SIZE)
    assert jnp.allclose(out, ref, atol=1e-5, rtol=1e-5)

    # Second check: non-multiple-of-tile batch to exercise the multi-tile grid
    # and the ragged (masked) tail block without any jnp.pad copy.
    batch2 = 20
    x2 = jax.random.normal(jax.random.PRNGKey(1), (batch2, INPUT_SIZE), jnp.float32)
    out2 = mlp_forward(x2, w1, b1, w2, b2, max_tb=16)
    jax.block_until_ready(out2)
    ref2 = _reference(x2, w1, b1, w2, b2)
    assert out2.shape == (batch2, OUTPUT_SIZE)
    assert jnp.allclose(out2, ref2, atol=1e-5, rtol=1e-5)

    print("KERNEL_OK")
</pallas_src>

<mosaic_0001>
module attributes {stable_mosaic.version = 11 : i64} {
  func.func @_mlp_kernel(%arg0: i32, %arg1: memref<8x24xf32, #tpu.memory_space<vmem>>, %arg2: memref<24x32xf32, #tpu.memory_space<vmem>>, %arg3: memref<1x32xf32, #tpu.memory_space<vmem>>, %arg4: memref<32x3xf32, #tpu.memory_space<vmem>>, %arg5: memref<1x3xf32, #tpu.memory_space<vmem>>, %arg6: memref<8x3xf32, #tpu.memory_space<vmem>>) attributes {dimension_semantics = [#tpu.dimension_semantics<parallel>], iteration_bounds = array<i64: 1>, scalar_prefetch = 0 : i64, scratch_operands = 0 : i64, tpu.core_type = #tpu.core_type<tc>, window_params = [{transform_indices = @transform_0, window_bounds = array<i64: 8, 24>}, {pipeline_mode = #tpu.pipeline_mode<synchronous>, transform_indices = @transform_1, window_bounds = array<i64: 24, 32>}, {pipeline_mode = #tpu.pipeline_mode<synchronous>, transform_indices = @transform_2, window_bounds = array<i64: 1, 32>}, {pipeline_mode = #tpu.pipeline_mode<synchronous>, transform_indices = @transform_3, window_bounds = array<i64: 32, 3>}, {pipeline_mode = #tpu.pipeline_mode<synchronous>, transform_indices = @transform_4, window_bounds = array<i64: 1, 3>}, {transform_indices = @transform_5, window_bounds = array<i64: 8, 3>}]} {
    %c0 = arith.constant 0 : index
    %c0_0 = arith.constant 0 : index
    %0 = vector.load %arg1[%c0, %c0_0] : memref<8x24xf32, #tpu.memory_space<vmem>>, vector<8x24xf32>
    %c0_1 = arith.constant 0 : index
    %c0_2 = arith.constant 0 : index
    %1 = vector.load %arg2[%c0_1, %c0_2] : memref<24x32xf32, #tpu.memory_space<vmem>>, vector<24x32xf32>
    %cst = arith.constant dense<0.000000e+00> : vector<8x32xf32>
    %2 = tpu.matmul %0, %1, %cst {dimension_numbers = #tpu.dot_dimension_numbers<[1], [0], [0], [1], [0, 0, 1, 1], [], []>} : vector<8x24xf32>, vector<24x32xf32>, vector<8x32xf32> -> vector<8x32xf32>
    %c0_3 = arith.constant 0 : index
    %c0_4 = arith.constant 0 : index
    %3 = vector.load %arg3[%c0_3, %c0_4] : memref<1x32xf32, #tpu.memory_space<vmem>>, vector<1x32xf32>
    %4 = vector.broadcast %3 : vector<1x32xf32> to vector<8x32xf32>
    %5 = arith.addf %2, %4 : vector<8x32xf32>
    %cst_5 = arith.constant 0.000000e+00 : f32
    %6 = vector.broadcast %cst_5 : f32 to vector<8x32xf32>
    %7 = arith.cmpf oge, %5, %6 : vector<8x32xf32>
    %cst_6 = arith.constant 0.00999999977 : f32
    %8 = vector.broadcast %cst_6 : f32 to vector<8x32xf32>
    %9 = arith.mulf %8, %5 : vector<8x32xf32>
    %10 = arith.select %7, %5, %9 : vector<8x32xi1>, vector<8x32xf32>
    %c0_7 = arith.constant 0 : index
    %c0_8 = arith.constant 0 : index
    %11 = vector.load %arg4[%c0_7, %c0_8] : memref<32x3xf32, #tpu.memory_space<vmem>>, vector<32x3xf32>
    %cst_9 = arith.constant dense<0.000000e+00> : vector<8x3xf32>
    %12 = tpu.matmul %10, %11, %cst_9 {dimension_numbers = #tpu.dot_dimension_numbers<[1], [0], [0], [1], [0, 0, 1, 1], [], []>} : vector<8x32xf32>, vector<32x3xf32>, vector<8x3xf32> -> vector<8x3xf32>
    %c0_10 = arith.constant 0 : index
    %c0_11 = arith.constant 0 : index
    %13 = vector.load %arg5[%c0_10, %c0_11] : memref<1x3xf32, #tpu.memory_space<vmem>>, vector<1x3xf32>
    %14 = vector.broadcast %13 : vector<1x3xf32> to vector<8x3xf32>
    %15 = arith.addf %12, %14 : vector<8x3xf32>
    %c0_12 = arith.constant 0 : index
    %c0_13 = arith.constant 0 : index
    %16 = vector.load %arg6[%c0_12, %c0_13] : memref<8x3xf32, #tpu.memory_space<vmem>>, vector<8x3xf32>
    tpu.vector_store %arg6[%c0_12, %c0_13], %15 {strides = array<i32>} : memref<8x3xf32, #tpu.memory_space<vmem>>, vector<8x3xf32>,
    return
  }
  func.func @transform_0(%arg0: i32) -> (i32, i32) {
    %c0_i32 = arith.constant 0 : i32
    %c0_i32_0 = arith.constant 0 : i32
    return %arg0, %c0_i32 : i32, i32
  }
  func.func @transform_1(%arg0: i32) -> (i32, i32) {
    %c0_i32 = arith.constant 0 : i32
    %c0_i32_0 = arith.constant 0 : i32
    %c0_i32_1 = arith.constant 0 : i32
    return %c0_i32, %c0_i32_0 : i32, i32
  }
  func.func @transform_2(%arg0: i32) -> (i32, i32) {
    %c0_i32 = arith.constant 0 : i32
    %c0_i32_0 = arith.constant 0 : i32
    %c0_i32_1 = arith.constant 0 : i32
    return %c0_i32, %c0_i32_0 : i32, i32
  }
  func.func @transform_3(%arg0: i32) -> (i32, i32) {
    %c0_i32 = arith.constant 0 : i32
    %c0_i32_0 = arith.constant 0 : i32
    %c0_i32_1 = arith.constant 0 : i32
    return %c0_i32, %c0_i32_0 : i32, i32
  }
  func.func @transform_4(%arg0: i32) -> (i32, i32) {
    %c0_i32 = arith.constant 0 : i32
    %c0_i32_0 = arith.constant 0 : i32
    %c0_i32_1 = arith.constant 0 : i32
    return %c0_i32, %c0_i32_0 : i32, i32
  }
  func.func @transform_5(%arg0: i32) -> (i32, i32) {
    %c0_i32 = arith.constant 0 : i32
    %c0_i32_0 = arith.constant 0 : i32
    return %arg0, %c0_i32 : i32, i32
  }
}

</mosaic_0001>

<bundles_post_ra>
// kernel: tpu_custom_call.1
= control target key start
LH: loop header
LB: loop body
LE: loop exit
PB: predicated region body
PF: predicated region fallthrough
CT: control target
= control target key end

     0   :  { %v234_v0 = vmov 0.0   ;;  %vm235_vm0 = vmmov 0   ;;  %vm31_vm1 = vcmask 195584   ;;  %vm119_vm3 = vcmask 261120   ;;  %s299_s1 = inlined_call_operand.vmem [shape: f32[24,32], index: 1, kind: input, shape index: {}]   ;;  %s300_s3 = inlined_call_operand.vmem [shape: f32[32,3], index: 3, kind: input, shape index: {}]   ;;  %s301_s0 = inlined_call_operand.vmem [shape: f32[8,24], index: 0, kind: input, shape index: {}]   ;;  %s302_s2 = inlined_call_operand.vmem [shape: f32[1,32], index: 2, kind: input, shape index: {}]   ;;  %s303_s4 = inlined_call_operand.vmem [shape: f32[1,3], index: 4, kind: input, shape index: {}]   ;;  %s304_s5 = inlined_call_operand.vmem [shape: f32[8,3], index: 5, kind: output, shape index: {}]  }
   0x1   :  { %212 = vmatprep.subr.mxu0 %v234_v0  ;;  %v23_v1 = vld [vmem:[%s299_s1 + $0x10] sm:$0xff]  ;;  %v22_v2 = vld [vmem:[%s299_s1 + $0x8] sm:$0xff]  ;;  %218 = vmatprep.mubr.msk.f32.mxu0 %vm235_vm0, %v234_v0  ;;  %v111_v3 = vld [vmem:[%s300_s3 + $0x18] sm:$0xff]  ;;  %vm193_vm4 = vcmask 23552  }
   0x2   :  { %213 = vmatpush3.msra.mxu0 %v23_v1  ;;  %221 = vmatprep.subr.mxu1 %v234_v0  ;;  %v21_v4 = vld [vmem:[%s299_s1] sm:$0xff]  ;;  %v110_v6 = vld [vmem:[%s300_s3 + $0x10] sm:$0xff]  ;;  %v109_v7 = vld [vmem:[%s300_s3 + $0x8] sm:$0xff] }
   0x3   :  { %214 = vmatprep.subr.mxu0 %v234_v0  ;;  %222 = vmatpush3.msra.mxu1 %v111_v3  ;;  %v20_v5 = vld [vmem:[%s301_s0] sm:$0xff] }
   0x4   :  { %215 = vmatpush3.msra.mxu0 %v22_v2  ;;  %223 = vmatprep.subr.mxu1 %v234_v0  ;;  %v108_v8 = vld [vmem:[%s300_s3] sm:$0xff] }
   0x5   :  { %216 = vmatprep.subr.mxu0 %v234_v0  ;;  %229 = vmatprep.mubr.msk.f32.mxu1 %vm235_vm0, %v234_v0  ;;  %v199_v9 = vld [vmem:[%s302_s2] ss:$0 sm:$0xff] }
   0x6   :  { %217 = vmatpush3.msra.mxu0 %v21_v4  ;;  %224 = vmatpush3.msra.mxu1 %v110_v6  ;;  %v201_v15 = vld [vmem:[%s303_s4] ss:$0 sm:$0xff] }
   0x7   :  { %219 = vmatmul.mubr.msk.f32.vlgmr.msra.gmra.mxu0 %vm31_vm1, %v20_v5  ;;  %225 = vmatprep.subr.mxu1 %v234_v0 }
   0x8   :  { %226 = vmatpush3.msra.mxu1 %v109_v7 }
   0x9   :  { %227 = vmatprep.subr.mxu1 %v234_v0 }
   0xa   :  { %228 = vmatpush3.msra.mxu1 %v108_v8 }
  0xc7   :  { %v101_v10 = vpop.f32.mrf.mxu0 }
  0xc8   :  { %v102_v11 = vadd.f32 %v199_v9, %v101_v10 }
  0xc9   :  { %v220_v12 = vpop.f32.mrf.mxu0 }
  0xca   :  { %vm105_vm2 = vcmp.ge.f32.partialorder %v102_v11, 0.0  ;;  %v106_v13 = vmul.f32 0.01, %v102_v11 }
  0xcc   :  { %v107_v14 = vsel %vm105_vm2, %v102_v11, %v106_v13 }
  0xcd   :  { %230 = vmatmul.mubr.msk.f32.vlgmr.msra.gmra.mxu1 %vm119_vm3, %v107_v14 }
 0x18d   :  { %v189_v16 = vpop.f32.mrf.mxu1 }
 0x18e   :  { %v190_v17 = vadd.f32 %v201_v15, %v189_v16 }
 0x18f   :  { %v231_v18 = vpop.f32.mrf.mxu1 }
 0x190   :  { %194 = vst.msk [vmem:[%s304_s5] sm:$0xff] %vm193_vm4, %v190_v17 }

</bundles_post_ra>
